<compile_context>
chip_gen: v7x
topology: tpu7x:2x2x1
jax: 0.10.0
libtpu: 0.0.40
codegen_flags: <defaults>
</compile_context>

<pallas_src>
import jax
import jax.numpy as jnp
from jax.experimental import pallas as pl
from jax.experimental.pallas import tpu as pltpu


def _copy_kernel(x_ref, o_ref):
    # Pure pass-through: whole-tile VMEM load + store.
    o_ref[...] = x_ref[...]


def _choose_layout(total_elems, itemsize):
    """Pick a lane-dense 2-D layout and a VMEM-budgeted row tile."""
    # dtype-aware sublane multiple so blocks are whole packed vregs:
    # f32 -> 8, bf16/f16 -> 16, int8/fp8 -> 32.
    sub = {1: 32, 2: 16}.get(itemsize, 8)

    # Wide lane-dense last dim (multiple of 128): unmasked full-width vst and
    # large contiguous DMA descriptors per grid step.
    lanes = 128
    for cand in (8192, 4096, 2048, 1024, 512, 256, 128):
        if total_elems >= cand * sub:
            lanes = cand
            break

    rows = pl.cdiv(total_elems, lanes)

    # Row tile budgeted at ~2 MiB per block.  With in + out each double
    # buffered that is <= 8 MiB live VMEM, comfortably under the 16/32 MiB
    # scoped defaults across v5e / v6e / v7x while still amortizing per-step
    # overhead.
    target_block_bytes = 2 * 1024 * 1024
    tile_rows = max(sub, min(rows, target_block_bytes // (lanes * itemsize)))
    tile_rows = max(sub, (tile_rows // sub) * sub)

    rows_padded = pl.cdiv(rows, tile_rows) * tile_rows
    return lanes, rows_padded, tile_rows


def encoder_forward(x, *args):
    """Pass-through 'forward' of the abstract Encoder, run through Pallas.

    x: jnp array of any shape (e.g. NCHW [N, C, H, W]).
    Returns an array identical to x (same shape, dtype, values).
    """
    orig_shape = x.shape
    total = x.size
    itemsize = jnp.dtype(x.dtype).itemsize

    lanes, rows_padded, tile_rows = _choose_layout(total, itemsize)
    padded_total = rows_padded * lanes

    # Flatten to a lane-dense 2-D slab; pad the tail instead of falling back
    # to a single whole-array block.
    flat = x.reshape(-1)
    if padded_total != total:
        flat = jnp.pad(flat, (0, padded_total - total))
    x2d = flat.reshape(rows_padded, lanes)

    out2d = pl.pallas_call(
        _copy_kernel,
        out_shape=jax.ShapeDtypeStruct((rows_padded, lanes), x.dtype),
        grid=(rows_padded // tile_rows,),
        in_specs=[pl.BlockSpec((tile_rows, lanes), lambda i: (i, 0))],
        out_specs=pl.BlockSpec((tile_rows, lanes), lambda i: (i, 0)),
        # Output aliases the input slab: no separate output HBM buffer for the
        # pure identity.
        input_output_aliases={0: 0},
        compiler_params=pltpu.CompilerParams(
            dimension_semantics=("parallel",),
            vmem_limit_bytes=32 * 1024 * 1024,
        ),
    )(x2d)

    return out2d.reshape(-1)[:total].reshape(orig_shape)


if __name__ == "__main__":
    key = jax.random.PRNGKey(0)
    # Small NCHW input consistent with an encoder interface: batch=2, C=4, 16x16.
    x = jax.random.normal(key, (2, 4, 16, 16), dtype=jnp.float32)

    y = jax.jit(encoder_forward)(x)
    y = jax.block_until_ready(y)

    # Sanity: pass-through must be exact.
    assert y.shape == x.shape and y.dtype == x.dtype
    assert bool(jnp.all(y == x))

    print("KERNEL_OK")
</pallas_src>

<mosaic_0001>
module attributes {stable_mosaic.version = 11 : i64} {
  func.func @_copy_kernel(%arg0: i32, %arg1: memref<8x256xf32, #tpu.memory_space<vmem>>, %arg2: memref<8x256xf32, #tpu.memory_space<vmem>>) attributes {dimension_semantics = [#tpu.dimension_semantics<parallel>], iteration_bounds = array<i64: 1>, scalar_prefetch = 0 : i64, scratch_operands = 0 : i64, tpu.core_type = #tpu.core_type<tc>, window_params = [{transform_indices = @transform_0, window_bounds = array<i64: 8, 256>}, {transform_indices = @transform_1, window_bounds = array<i64: 8, 256>}]} {
    %c0 = arith.constant 0 : index
    %c0_0 = arith.constant 0 : index
    %0 = vector.load %arg1[%c0, %c0_0] : memref<8x256xf32, #tpu.memory_space<vmem>>, vector<8x256xf32>
    %c0_1 = arith.constant 0 : index
    %c0_2 = arith.constant 0 : index
    %1 = vector.load %arg2[%c0_1, %c0_2] : memref<8x256xf32, #tpu.memory_space<vmem>>, vector<8x256xf32>
    tpu.vector_store %arg2[%c0_1, %c0_2], %0 {strides = array<i32>} : memref<8x256xf32, #tpu.memory_space<vmem>>, vector<8x256xf32>,
    return
  }
  func.func @transform_0(%arg0: i32) -> (i32, i32) {
    %c0_i32 = arith.constant 0 : i32
    %c0_i32_0 = arith.constant 0 : i32
    return %arg0, %c0_i32 : i32, i32
  }
  func.func @transform_1(%arg0: i32) -> (i32, i32) {
    %c0_i32 = arith.constant 0 : i32
    %c0_i32_0 = arith.constant 0 : i32
    return %arg0, %c0_i32 : i32, i32
  }
}

</mosaic_0001>

<bundles_post_ra>
// kernel: encoder_forward.1
= control target key start
LH: loop header
LB: loop body
LE: loop exit
PB: predicated region body
PF: predicated region fallthrough
CT: control target
= control target key end

     0   :  { %s38_s0 = inlined_call_operand.vmem [shape: f32[8,256], index: 0, kind: input, shape index: {}, may-alias: {0,1}]   ;;  %s39_s1 = inlined_call_operand.vmem [shape: f32[8,256], index: 1, kind: output, shape index: {}, may-alias: {0,1}]  }
   0x1   :  { %v8_v0 = vld [vmem:[%s38_s0] sm:$0xff]  ;;  %v9_v1 = vld [vmem:[%s38_s0 + $0x8] sm:$0xff] }
   0x2   :  { %10 = vst [vmem:[%s39_s1] sm:$0xff] %v8_v0  ;;  %11 = vst [vmem:[%s39_s1 + $0x8] sm:$0xff] %v9_v1 }

</bundles_post_ra>
